<compile_context>
chip_gen: v5e
topology: v5e:2x2
jax: 0.10.0
libtpu: 0.0.40
codegen_flags: <defaults>
</compile_context>

<pallas_src>
import functools

import jax
import jax.numpy as jnp
from jax.experimental import pallas as pl
from jax.experimental.pallas import tpu as pltpu


def _round_up(n: int, m: int) -> int:
    return ((n + m - 1) // m) * m


def _layernorm_kernel(x_ref, g_ref, b_ref, o_ref, *, eps: float, feat: int):
    # x_ref: (T, D) block of rows; g_ref/b_ref: (1, D) gamma/beta; o_ref: (T, D).
    x = x_ref[...].astype(jnp.float32)
    mean = jnp.mean(x, axis=-1, keepdims=True)
    xc = x - mean
    # torch.Tensor.std uses Bessel's correction (divide by D-1).
    var = jnp.sum(xc * xc, axis=-1, keepdims=True) * (1.0 / float(feat - 1))
    # Matches the PyTorch module exactly: eps is added to the std (not the var).
    # Exact (T,1) reciprocal, then broadcast-multiply -> no full-width (T,D) divide.
    inv = 1.0 / (jnp.sqrt(var) + eps)
    g = g_ref[...].astype(jnp.float32)
    b = b_ref[...].astype(jnp.float32)
    o_ref[...] = ((xc * inv) * g + b).astype(o_ref.dtype)


def _pick_block_rows(n_rows: int, d: int, dtype) -> int:
    """Generation- and dtype-aware row-block size for the streaming LN kernel."""
    itemsize = jnp.dtype(dtype).itemsize
    # Sub-32-bit dtypes pack along sublanes: min clean tile is (16,128) bf16, (32,128) int8/fp8.
    sub = {4: 8, 2: 16, 1: 32}.get(itemsize, 8)

    try:
        kind = jax.devices()[0].device_kind.lower()
    except Exception:  # pragma: no cover - defensive only
        kind = ""
    is_v7 = "v7" in kind

    # Target activation-tile size:
    #   v5e/v6e: ~1 MiB (>= ~85% of HBM roofline, step overhead amortized)
    #   v7x:     ~2 MiB (3.2 TB/s HBM per TC hides ~1 MiB of step overhead alone)
    target_bytes = (2 if is_v7 else 1) * 1024 * 1024
    # Keep the 2 input + 2 output double-buffered tiles comfortably under the scoped
    # VMEM default (16 MiB on v5e, 32 MiB on v6e/v7x) with headroom for the f32
    # intermediates inside the kernel, so no vmem_limit_bytes override is needed even
    # for large d_model. Never split D — the reduction needs the whole row.
    vmem_budget = (20 if is_v7 else 10) * 1024 * 1024

    row_bytes = d * itemsize
    t = min(target_bytes // row_bytes, vmem_budget // (4 * row_bytes))
    t = max(sub, (t // sub) * sub)
    t = min(t, _round_up(n_rows, sub))

    # Guarantee >= 2 grid blocks when possible so the "parallel" axis can actually be
    # sharded across v7x's two TensorCores (a single block leaves one TC idle).
    if n_rows >= 2 * sub:
        t = min(t, _round_up(pl.cdiv(n_rows, 2), sub))
    return max(t, sub)


def layer_norm(x: jax.Array, gamma: jax.Array, beta: jax.Array,
               eps: float = 1e-6) -> jax.Array:
    """Pallas equivalent of LayerNormalization(features)(x) over the last dim."""
    orig_shape = x.shape
    D = orig_shape[-1]
    x2 = x.reshape(-1, D)                     # layout no-op: (B, S, D) -> (B*S, D)
    N = x2.shape[0]

    T = _pick_block_rows(N, D, x2.dtype)
    grid = (pl.cdiv(N, T),)

    g2 = gamma.reshape(1, D)
    b2 = beta.reshape(1, D)

    kernel = functools.partial(_layernorm_kernel, eps=float(eps), feat=int(D))

    out = pl.pallas_call(
        kernel,
        out_shape=jax.ShapeDtypeStruct((N, D), x.dtype),
        grid=grid,
        in_specs=[
            pl.BlockSpec((T, D), lambda i: (i, 0)),   # row block of activations
            pl.BlockSpec((1, D), lambda i: (0, 0)),   # gamma (resident every step)
            pl.BlockSpec((1, D), lambda i: (0, 0)),   # beta
        ],
        out_specs=pl.BlockSpec((T, D), lambda i: (i, 0)),
        compiler_params=pltpu.CompilerParams(
            # Independent row blocks, no carried accumulator -> shard across TCs on v7x.
            dimension_semantics=("parallel",),
            # Let XLA fuse the elementwise tail of the last sub-layer (residual/tanh/
            # mask) into this kernel's activation read, removing one full HBM
            # write+read of the activations at the kernel boundary.
            allow_input_fusion=[True, False, False],
        ),
        # NOTE: input_output_aliases={0: 0} would also be legal (LN is shape-preserving
        # and the pre-norm tensor is dead), but it conflicts with fusing the producer
        # into the input, so the bandwidth-saving fusion is preferred.
    )(x2, g2, b2)

    return out.reshape(orig_shape)


def encoder_layer(x: jax.Array, mask: jax.Array, layers, gamma: jax.Array,
                  beta: jax.Array, eps: float = 1e-6) -> jax.Array:
    """Forward of EncoderLayer: apply each sub-layer, then the final layer norm."""
    # TODO(synk): `self.layers` is an nn.ModuleList whose contents (attention/FFN
    # residual blocks) are not defined in the spec; they are applied here as opaque
    # JAX callables `layer(x, mask)` rather than as MXU-driven Pallas kernels.
    for layer in layers:
        x = layer(x, mask)
    return layer_norm(x, gamma, beta, eps)


if __name__ == "__main__":
    # Small, deterministic setup consistent with the module's forward:
    #   x: (batch, seq, d_model) activations; mask broadcastable over x.
    batch, seq, d_model = 2, 8, 128
    eps = 1e-6

    key = jax.random.PRNGKey(0)
    kx, km, kg, kb = jax.random.split(key, 4)

    x = jax.random.normal(kx, (batch, seq, d_model), dtype=jnp.float32)
    mask = (jax.random.uniform(km, (batch, seq, 1)) > 0.2).astype(jnp.float32)
    # Parameters of LayerNormalization (init is ones/zeros; perturb to exercise them).
    gamma = jnp.ones((d_model,), jnp.float32) + 0.1 * jax.random.normal(kg, (d_model,))
    beta = jnp.zeros((d_model,), jnp.float32) + 0.1 * jax.random.normal(kb, (d_model,))

    # Stand-ins for the caller-provided sub-layers (residual-style, mask-aware).
    def sub_layer_a(h, m):
        return h + 0.5 * jnp.tanh(h) * m

    def sub_layer_b(h, m):
        return h + 0.1 * h * h * m

    layers = [sub_layer_a, sub_layer_b]

    out = jax.jit(
        lambda x_, m_, g_, b_: encoder_layer(x_, m_, layers, g_, b_, eps)
    )(x, mask, gamma, beta)
    out = jax.block_until_ready(out)

    # Pure-JAX reference, matching torch semantics (unbiased std, eps added to std).
    h = x
    for layer in layers:
        h = layer(h, mask)
    mean = h.mean(axis=-1, keepdims=True)
    std = jnp.std(h, axis=-1, ddof=1, keepdims=True)
    ref = gamma * (h - mean) / (std + eps) + beta

    assert out.shape == (batch, seq, d_model)
    assert jnp.allclose(out, ref, atol=1e-5, rtol=1e-5)

    print("KERNEL_OK")
</pallas_src>

<mosaic_0001>
module attributes {stable_mosaic.version = 11 : i64} {
  func.func @_layernorm_kernel(%arg0: i32, %arg1: memref<8x128xf32, #tpu.memory_space<vmem>>, %arg2: memref<1x128xf32, #tpu.memory_space<vmem>>, %arg3: memref<1x128xf32, #tpu.memory_space<vmem>>, %arg4: memref<8x128xf32, #tpu.memory_space<vmem>>) attributes {dimension_semantics = [#tpu.dimension_semantics<parallel>], iteration_bounds = array<i64: 2>, scalar_prefetch = 0 : i64, scratch_operands = 0 : i64, tpu.core_type = #tpu.core_type<tc>, window_params = [{transform_indices = @transform_0, window_bounds = array<i64: 8, 128>}, {pipeline_mode = #tpu.pipeline_mode<synchronous>, transform_indices = @transform_1, window_bounds = array<i64: 1, 128>}, {pipeline_mode = #tpu.pipeline_mode<synchronous>, transform_indices = @transform_2, window_bounds = array<i64: 1, 128>}, {transform_indices = @transform_3, window_bounds = array<i64: 8, 128>}]} {
    %c0 = arith.constant 0 : index
    %c0_0 = arith.constant 0 : index
    %0 = vector.load %arg1[%c0, %c0_0] : memref<8x128xf32, #tpu.memory_space<vmem>>, vector<8x128xf32>
    %cst = arith.constant dense<0.000000e+00> : vector<8xf32>
    %1 = vector.multi_reduction <add>, %0, %cst [1] : vector<8x128xf32> to vector<8xf32>
    %2 = vector.shape_cast %1 : vector<8xf32> to vector<8x1xf32>
    %cst_1 = arith.constant 1.280000e+02 : f32
    %3 = vector.broadcast %cst_1 : f32 to vector<8x1xf32>
    %4 = arith.divf %2, %3 : vector<8x1xf32>
    %5 = vector.broadcast %4 : vector<8x1xf32> to vector<8x128xf32>
    %6 = arith.subf %0, %5 : vector<8x128xf32>
    %7 = arith.mulf %6, %6 : vector<8x128xf32>
    %cst_2 = arith.constant dense<0.000000e+00> : vector<8xf32>
    %8 = vector.multi_reduction <add>, %7, %cst_2 [1] : vector<8x128xf32> to vector<8xf32>
    %9 = vector.shape_cast %8 : vector<8xf32> to vector<8x1xf32>
    %cst_3 = arith.constant 0.00787401571 : f32
    %10 = vector.broadcast %cst_3 : f32 to vector<8x1xf32>
    %11 = arith.mulf %9, %10 : vector<8x1xf32>
    %12 = math.sqrt %11 : vector<8x1xf32>
    %cst_4 = arith.constant 9.99999997E-7 : f32
    %13 = vector.broadcast %cst_4 : f32 to vector<8x1xf32>
    %14 = arith.addf %12, %13 : vector<8x1xf32>
    %cst_5 = arith.constant 1.000000e+00 : f32
    %15 = vector.broadcast %cst_5 : f32 to vector<8x1xf32>
    %16 = arith.divf %15, %14 : vector<8x1xf32>
    %c0_6 = arith.constant 0 : index
    %c0_7 = arith.constant 0 : index
    %17 = vector.load %arg2[%c0_6, %c0_7] : memref<1x128xf32, #tpu.memory_space<vmem>>, vector<1x128xf32>
    %c0_8 = arith.constant 0 : index
    %c0_9 = arith.constant 0 : index
    %18 = vector.load %arg3[%c0_8, %c0_9] : memref<1x128xf32, #tpu.memory_space<vmem>>, vector<1x128xf32>
    %19 = vector.broadcast %16 : vector<8x1xf32> to vector<8x128xf32>
    %20 = arith.mulf %6, %19 : vector<8x128xf32>
    %21 = vector.broadcast %17 : vector<1x128xf32> to vector<8x128xf32>
    %22 = arith.mulf %20, %21 : vector<8x128xf32>
    %23 = vector.broadcast %18 : vector<1x128xf32> to vector<8x128xf32>
    %24 = arith.addf %22, %23 : vector<8x128xf32>
    %c0_10 = arith.constant 0 : index
    %c0_11 = arith.constant 0 : index
    %25 = vector.load %arg4[%c0_10, %c0_11] : memref<8x128xf32, #tpu.memory_space<vmem>>, vector<8x128xf32>
    tpu.vector_store %arg4[%c0_10, %c0_11], %24 {strides = array<i32>} : memref<8x128xf32, #tpu.memory_space<vmem>>, vector<8x128xf32>,
    return
  }
  func.func @transform_0(%arg0: i32) -> (i32, i32) {
    %c0_i32 = arith.constant 0 : i32
    %c0_i32_0 = arith.constant 0 : i32
    return %arg0, %c0_i32 : i32, i32
  }
  func.func @transform_1(%arg0: i32) -> (i32, i32) {
    %c0_i32 = arith.constant 0 : i32
    %c0_i32_0 = arith.constant 0 : i32
    %c0_i32_1 = arith.constant 0 : i32
    return %c0_i32, %c0_i32_0 : i32, i32
  }
  func.func @transform_2(%arg0: i32) -> (i32, i32) {
    %c0_i32 = arith.constant 0 : i32
    %c0_i32_0 = arith.constant 0 : i32
    %c0_i32_1 = arith.constant 0 : i32
    return %c0_i32, %c0_i32_0 : i32, i32
  }
  func.func @transform_3(%arg0: i32) -> (i32, i32) {
    %c0_i32 = arith.constant 0 : i32
    %c0_i32_0 = arith.constant 0 : i32
    return %arg0, %c0_i32 : i32, i32
  }
}

</mosaic_0001>

<bundles_post_ra>
// kernel: _lambda_.2
= control target key start
LH: loop header
LB: loop body
LE: loop exit
PB: predicated region body
PF: predicated region fallthrough
CT: control target
= control target key end

     0   :  { %s906_s0 = inlined_call_operand.vmem [shape: f32[1,128], index: 0, kind: input, shape index: {}]   ;;  %s907_s1 = inlined_call_operand.vmem [shape: f32[1,128], index: 1, kind: input, shape index: {}]   ;;  %s908_s2 = inlined_call_operand.hbm [shape: f32[2,8,128], index: 2, kind: input, shape index: {}]   ;;  %s909_s3 = inlined_call_operand.vmem [shape: f32[2,8], index: 3, kind: input, shape index: {}]   ;;  %s910_s4 = inlined_call_operand.vmem [shape: f32[2,8], index: 4, kind: input, shape index: {}]   ;;  %s911_s5 = inlined_call_operand.<no memory space> [shape: f32[], index: 5, kind: input, shape index: {}]   ;;  %s912_s6 = inlined_call_operand.hbm [shape: f32[16,128], index: 6, kind: output, shape index: {}]  }
   0x1   :  { %v11_v0 = vstv %s911_s5 }
   0x2   :  { %12 = vsyncpa [#allocation3], 0 }
   0x3   :  { %14 = vsyncpa [#allocation3 + $0x1], 0 }
   0x4   :  { %15 = vsyncpa [#allocation4], 0 }
   0x5   :  { %17 = vsyncpa [#allocation4 + $0x1], 0  ;;  %s757_s23 = smov 0   ;;  %s759_s24 = smov 0  }
   0x6   :  { %s761_s25 = smov 0   ;;  %s763_s26 = smov 0  }
   0x7 LB: > { %s778_s27 = sadd.s32 4294967295, %s716_s26   ;;  %s546_s28 = sadd.s32 4294967294, %s716_s26   ;;  %s716_s26 = sphi %s763_s26, %s922_s26   ;;  %s712_s25 = sphi %s761_s25, %s921_s25   ;;  %s708_s24 = sphi %s759_s24, %s920_s24   ;;  %s704_s23 = sphi %s757_s23, %s919_s23  }
   0x8   : > { %s782_s29 = sadd.s32 1, %s716_s26   ;;  %s30_s30 = sadd.s32 1, %s712_s25 }
   0x9   : > { %s27_s7 = ssub.s32 %s716_s26, %s782_s29  ;;  %p37_p0 = scmp.ne.s32.totalorder %s712_s25, %s708_s24 }
   0xa   : > { %p28_p1 = scmp.eq.s32.totalorder %s27_s7, 0  ;;  %p38_p2 = scmp.eq.s32.totalorder %s716_s26, 0 }
   0xb   : > { %p43_p3 = scmp.ne.s32.totalorder %s708_s24, %s704_s23  ;;  %p44_p4 = scmp.eq.s32.totalorder %s778_s27, 0 }
   0xc   : > { %s794_s8 = scalar_select %p28_p1, %s712_s25, %s30_s30  }
   0xd   : > { %p796_p5 = por %p38_p2, %p37_p0  ;;  %p800_p6 = por %p44_p4, %p43_p3 }
   0xe   : > { %p165_p7 = scmp.eq.s32.totalorder %s778_s27, 1  ;;  %p171_p8 = scmp.eq.s32.totalorder %s546_s28, 1 }
   0xf   : > { %p574_p10 = scmp.lt.s32.totalorder %s716_s26, 2  ;;  %s197_s13 = sand.u32 1, %s712_s25  }
  0x10   : > { %p807_p11 = por %p165_p7, %p37_p0  ;;  %p811_p12 = por %p171_p8, %p43_p3 }
  0x11   : > { %s550_s14 = sshll.u32 %s716_s26, 3  ;;  %s549_s15 = sshll.u32 %s197_s13, 3 }
  0x12   : > { %s205_s18 = scalar_lea.hbm %s908_s2, %s550_s14  ;;  %s201_s20 = scalar_lea.vmem [#allocation2], %s549_s15 }
  0x13   : > { %s207_s19 = sshll.u32 %s205_s18, 4  ;;  %s209_s21 = sshll.u32 %s201_s20, 4  ;;  %s208_s19 = int_to_ptr.hbm [resolvable:$true] %s207_s19  ;;  %s210_s21 = int_to_ptr.vmem [resolvable:$true] %s209_s21 }
  0x14   : > { %p822_p13 = pnand %p574_p10, %p796_p5  ;;  %p551_p0 = scmp.ge.s32.totalorder %s716_s26, 1 }
  0x15   : > { %p240_p1 = scmp.lt.s32.totalorder %s716_s26, 3  ;;  %s198_s28 = scalar_lea.sflag [#allocation3], %s197_s13 }
  0x16   : > { %s620_s30 = sshra.s32 %s208_s19, 4  ;;  %p624_p3 = pneg %p822_p13  ;;  %s621_s30 = int_to_ptr.hbm [resolvable:$true] %s620_s30 }
  0x17   : > { %s622_s7 = scalar_lea.hbm %s621_s30, 8  ;;  %s627_s9 = scalar_lea.hbm %s908_s2, 16 }
  0x18   : > { %p623_p2 = scmp.ne.s32.totalorder %s621_s30, %s622_s7  ;;  %p628_p5 = scmp.lt.s32.totalorder %s621_s30, %s908_s2 }
  0x19   : > { %p629_p8 = scmp.lt.s32.totalorder %s627_s9, %s622_s7 }
  0x1a   : > { %p625_p4 = pnand %p624_p3, %p623_p2 }
  0x1b   : > { %p630_p10 = por %p629_p8, %p628_p5 }
  0x1c   : > { %p626_p7 = pneg %p625_p4 }
  0x1e   : > { %p631_p9 = pnand %p630_p10, %p626_p7 }
  0x20   : > { %634 = shalt.err (!%p631_p9)
}
  0x21   : > { %569 = dma.hbm_to_vmem [thread:$0]  (!%p822_p13), %s208_s19, 128, %s210_s21, %s198_s28  }
  0x22   : > { %p241_p2 = pnand %p551_p0, %p240_p1 }
  0x23   : > { %s843_s13 = sand.u32 (!%p241_p2), 1, %s708_s24  }
  0x24   : > { %244 = sbr.rel (%p241_p2) target bundleno = 469 (0x1d5), region = 40  ;;  %s552_s18 = sshll.u32 (!%p241_p2), %s843_s13, 3 }
  0x25   : > { %s247_s20 = scalar_lea.sflag (!%p241_p2), [#allocation3], %s843_s13  ;;  %s250_s30 = scalar_lea.vmem (!%p241_p2), [#allocation2], %s552_s18 }
  0x29   : > { %v322_v1 = vlaneseq }
  0x2a   : > { %695 = dma.done.wait (%p800_p6), %s247_s20, 128  }
  0x2b   : > { %697 = vsyncadd (%p800_p6), %s247_s20, 4294967168  ;;  %s313_s19 = sshrl.u32 %s778_s27, 1  ;;  %v323_v2 = vshrl.u32 %v322_v1, 7  ;;  %s316_s21 = sand.u32 1, %s778_s27   ;;  %v312_v5 = vld [vmem:[%s250_s30] sm:$0xff]  ;;  %v718_v15 = vmov 128.0  }
  0x2c   : > { %p554_p9 = scmp.gt.s32.totalorder %s313_s19, 0  ;;  %612 = vtanh.f32 %v312_v5  ;;  %s559_s30 = sshll.u32 %s778_s27, 3  ;;  %v610_v48 = vld [vmem:[%s906_s0] ss:$0 sm:$0xff] }
  0x2d   : > { %609 = vset.pattern.permute.xlu0 %v323_v2  ;;  %614 = vrcp.f32 %v718_v15  ;;  %v611_v51 = vld [vmem:[%s907_s1] ss:$0 sm:$0xff]  ;;  %s291_s9 = scalar_lea.vmem [#allocation5], %s552_s18 }
  0x2e   : > { %s924_s19 = smov (%p554_p9, %s313_s19), 0  ;;  %s443_s16 = sshll.u32 %s291_s9, 4  ;;  %s444_s16 = int_to_ptr.vmem [resolvable:$true] %s443_s16 }
  0x2f   : > { %s555_s22 = sshll.u32 %s924_s19, 1 }
  0x30   : > { %s318_s14 = scalar_lea.vmem %s909_s3, %s555_s22  ;;  %s333_s10 = scalar_lea.vmem %s910_s4, %s555_s22 }
  0x31   : > { %s320_s15 = scalar_lea.vmem %s318_s14, %s316_s21  ;;  %s335_s17 = scalar_lea.vmem %s333_s10, %s316_s21 }
  0x32   : > { %v321_v3 = vld [vmem:[%s320_s15] ss:$0 sm:$0xff]  ;;  %v613_v6 = vpop.eup %612  ;;  %s441_s14 = scalar_lea.hbm %s912_s6, %s559_s30  ;;  %s670_s22 = scalar_lea.hbm %s912_s6, 16 }
  0x33   : > { %v336_v4 = vld [vmem:[%s335_s17] ss:$0 sm:$0xff]  ;;  %v615_v16 = vpop.eup %614  ;;  %s445_s10 = sshll.u32 %s441_s14, 4  ;;  %s431_s17 = scalar_lea.sflag [#allocation4], %s843_s13  ;;  %s446_s10 = int_to_ptr.hbm [resolvable:$true] %s445_s10 }
  0x34   : > { %v378_v17 = vmul.f32 128.0, %v615_v16  ;;  %vm382_vm0 = vweird.f32 %v615_v16  ;;  %s664_s20 = sshra.s32 %s446_s10, 4  ;;  %s665_s20 = int_to_ptr.hbm [resolvable:$true] %s664_s20 }
  0x35   : > { %326 = vperm.xlu0 %609, %v321_v3   ;;  %s666_s19 = scalar_lea.hbm %s665_s20, 8  ;;  %p671_p1 = scmp.lt.s32.totalorder %s665_s20, %s912_s6 }
  0x36   : > { %v379_v18 = vsub.f32 1.0, %v378_v17  ;;  %p667_p6 = scmp.ne.s32.totalorder %s665_s20, %s666_s19  ;;  %p672_p3 = scmp.lt.s32.totalorder %s670_s22, %s666_s19 }
  0x38   : > { %v380_v19 = vmul.f32 %v615_v16, %v379_v18  ;;  %p668_p13 = pnand %p667_p6, %p807_p11  ;;  %p673_p4 = por %p672_p3, %p671_p1 }
  0x3a   : > { %v381_v20 = vadd.f32 %v615_v16, %v380_v19  ;;  %p669_p0 = pneg %p668_p13 }
  0x3c   : > { %v383_v21 = vsel %vm382_vm0, %v615_v16, %v381_v20  ;;  %p674_p7 = pnand %p673_p4, %p669_p0 }
  0x3d   : > { %341 = vperm.xlu0 %609, %v336_v4  }
  0xa7   : > { %v327_v7 = vpop.permute.xlu0 %326 }
  0xa8   : > { %v349_v8 = vmul.f32 %v613_v6, %v327_v7 }
  0xaa   : > { %v353_v9 = vadd.f32 %v349_v8, %v312_v5 }
  0xac   : > { %v357_v10 = vmul.f32 %v353_v9, %v11_v0 }
  0xae   : > { %v361_v11 = vmul.f32 %v357_v10, %v353_v9 }
  0xaf   : > { %v342_v12 = vpop.permute.xlu0 %341 }
  0xb0   : > { %v365_v13 = vmul.f32 %v361_v11, %v342_v12 }
  0xb2   : > { %v369_v14 = vadd.f32 %v365_v13, %v353_v9 }
  0xb4   : > { %375 = vadd.xlane.f32.xlu1 %v369_v14 }
 0x127   : > { %v376_v22 = vpop.xlane.xlu1 %375 }
 0x128   : > { %v384_v23 = vmul.f32 %v383_v21, %v376_v22 }
 0x12a   : > { %v385_v24 = vsub.f32 %v369_v14, %v384_v23 }
 0x12c   : > { %v386_v25 = vmul.f32 %v385_v24, %v385_v24 }
 0x12e   : > { %387 = vadd.xlane.f32.xlu1 %v386_v25 }
 0x1a1   : > { %v388_v26 = vpop.xlane.xlu1 %387 }
 0x1a2   : > { %v389_v27 = vmul.f32 0.007874016, %v388_v26 }
 0x1a4   : > { %616 = vrsqrt.f32 %v389_v27  ;;  %vm397_vm1 = vcmp.eq.f32.partialorder %v389_v27, inf  ;;  %v400_v35 = vand.u32 2147483648, %v389_v27  ;;  %vm399_vm2 = vcmp.eq.f32.partialorder %v389_v27, 0.0 }
 0x1aa   : > { %v617_v28 = vpop.eup %616 }
 0x1ab   : > { %v391_v29 = vmul.f32 %v617_v28, %v389_v27 }
 0x1ad   : > { %v392_v30 = vmul.f32 %v617_v28, %v391_v29 }
 0x1af   : > { %v393_v31 = vmul.f32 0.5, %v392_v30 }
 0x1b1   : > { %v394_v32 = vsub.f32 1.5, %v393_v31 }
 0x1b3   : > { %v395_v33 = vmul.f32 %v617_v28, %v394_v32 }
 0x1b5   : > { %v396_v34 = vmul.f32 %v395_v33, %v389_v27 }
 0x1b7   : > { %v398_v36 = vsel %vm397_vm1, %v389_v27, %v396_v34 }
 0x1b8   : > { %v401_v37 = vsel %vm399_vm2, %v400_v35, %v398_v36 }
 0x1b9   : > { %v402_v38 = vadd.f32 1e-06, %v401_v37 }
 0x1bb   : > { %618 = vrcp.f32 %v402_v38  ;;  %v414_v42 = vand.u32 2147483648, %v402_v38  ;;  %v412_v44 = vand.u32 2147483647, %v402_v38  ;;  %vm408_vm4 = vweird.f32 %v402_v38 }
 0x1bd   : > { %v415_v46 = vor.u32 1.1754944e-38, %v414_v42  ;;  %vm413_vm6 = vcmp.eq.f32.partialorder %v412_v44, 8.507059e+37 }
 0x1c1   : > { %v619_v39 = vpop.eup %618 }
 0x1c2   : > { %v404_v40 = vmul.f32 %v619_v39, %v402_v38  ;;  %vm409_vm3 = vweird.f32 %v619_v39 }
 0x1c3   : > { %vm410_vm5 = vmor %vm408_vm4, %vm409_vm3 }
 0x1c4   : > { %v405_v41 = vsub.f32 1.0, %v404_v40 }
 0x1c6   : > { %v406_v43 = vmul.f32 %v619_v39, %v405_v41 }
 0x1c8   : > { %v407_v45 = vadd.f32 %v619_v39, %v406_v43 }
 0x1ca   : > { %v411_v47 = vsel %vm410_vm5, %v619_v39, %v407_v45 }
 0x1cb   : > { %v416_v49 = vsel %vm413_vm6, %v415_v46, %v411_v47 }
 0x1cc   : > { %v420_v50 = vmul.f32 %v416_v49, %v385_v24 }
 0x1ce   : > { %v424_v52 = vmul.f32 %v610_v48, %v420_v50 }
 0x1d0   : > { %v428_v53 = vadd.f32 %v611_v51, %v424_v52 }
 0x1d2   : > { %429 = vst [vmem:[%s291_s9] sm:$0xff] %v428_v53 }
 0x1d3   : > { %677 = shalt.err (!%p674_p7)
}
 0x1d4   : > { %564 = dma.vmem_to_hbm [thread:$0]  (%p807_p11), %s444_s16, 128, %s446_s10, %s431_s17  }
 0x1d5 PF: > { %s457_s13 = sand.u32 1, %s704_s23   ;;  %p918_p5 = scmp.ge.s32.totalorder %s716_s26, 2 }
 0x1d6   : > { %s458_s7 = scalar_lea.sflag [#allocation4], %s457_s13 }
 0x1d7   : > { %p571_p8 = pnand %p918_p5, %p811_p12 }
 0x1d9   : > { %p572_p10 = pneg %p571_p8 }
 0x1db   : > { %699 = dma.done.wait (%p572_p10), %s458_s7, 128  }
 0x1dc   : > { %701 = vsyncadd (%p572_p10), %s458_s7, 4294967168  ;;  %p20_p2 = scmp.ge.s32.totalorder %s782_s29, 4   ;;  %s919_s23 = smov %s708_s24 }
 0x1dd   : > { %s920_s24 = smov %s712_s25  ;;  %s921_s25 = smov %s794_s8 }
 0x1de   : > { %s922_s26 = smov %s782_s29  ;;  %22 = sbr.rel (!%p20_p2) target bundleno = 7 (0x7), region = 95 }
 0x1e3   :  { %464 = vsyncpa [#allocation3], 1 }
 0x1e4   :  { %466 = vsyncpa [#allocation3 + $0x1], 1 }
 0x1e5   :  { %467 = vsyncpa [#allocation4], 1 }
 0x1e6   :  { %469 = vsyncpa [#allocation4 + $0x1], 1 }

</bundles_post_ra>
